<compile_context>
chip_gen: v7x
topology: tpu7x:2x2x1
jax: 0.10.0
libtpu: 0.0.40
codegen_flags: <defaults>
</compile_context>

<pallas_src>
import functools

import jax
import jax.numpy as jnp
from jax.experimental import pallas as pl
from jax.experimental.pallas import tpu as pltpu

OBS_DIM = 3
ACT_DIM = 2
HIDDEN = 6

SUBLANES = 8                          # f32 sublanes per vreg
CHUNK_LANES = 512                     # inner chunk width: (8, 512) slabs = 4 vregs
BATCH_ALIGN = SUBLANES * CHUNK_LANES  # 4096 batch rows per alignment unit
MAX_TILE_B = 131072                   # 128K rows -> ~2.5 MiB in+out per grid step


def _round_up(x, m):
    return (x + m - 1) // m * m


def _mu_kernel(obs_ref, w1_ref, b1_ref, w2_ref, b2_ref, mu_ref):
    """One batch tile of the mu-MLP, batch packed on sublanes+lanes.

    obs_ref : (OBS_DIM, 8, tile_w) f32 VMEM   -- batch on sublane x lane axes
    w1_ref  : (OBS_DIM, HIDDEN)    f32 SMEM   -- resident across grid steps
    b1_ref  : (HIDDEN,)            f32 SMEM
    w2_ref  : (HIDDEN, ACT_DIM)    f32 SMEM
    b2_ref  : (ACT_DIM,)           f32 SMEM
    mu_ref  : (ACT_DIM, 8, tile_w) f32 VMEM
    """
    tile_w = obs_ref.shape[-1]
    num_chunks = tile_w // CHUNK_LANES     # static; tile_w % CHUNK_LANES == 0

    # Hoist all SMEM scalar reads out of the chunk loop (38 sregs total).
    w1 = [[w1_ref[i, j] for j in range(HIDDEN)] for i in range(OBS_DIM)]
    b1 = [b1_ref[j] for j in range(HIDDEN)]
    w2 = [[w2_ref[j, k] for k in range(ACT_DIM)] for j in range(HIDDEN)]
    b2 = [b2_ref[k] for k in range(ACT_DIM)]

    # Lane-chunk loop: decouples big DMA blocks from the vreg working set.
    @pl.loop(0, num_chunks)
    def _chunk(c):
        off = pl.multiple_of(c * CHUNK_LANES, CHUNK_LANES)
        sl = pl.ds(off, CHUNK_LANES)

        # Full-occupancy (8, CHUNK_LANES) slabs, one per input feature.
        rows = [obs_ref[i, :, sl] for i in range(OBS_DIM)]

        # j-streaming: form h_j and immediately fold it into the mu
        # accumulators so only rows + h + 2 accumulators are live (~24 vregs).
        acc = [None] * ACT_DIM
        for j in range(HIDDEN):
            h = rows[0] * w1[0][j]
            for i in range(1, OBS_DIM):
                h = h + rows[i] * w1[i][j]
            h = jnp.maximum(h + b1[j], 0.0)
            for k in range(ACT_DIM):
                t = h * w2[j][k]
                acc[k] = t if acc[k] is None else acc[k] + t

        for k in range(ACT_DIM):
            mu_ref[k, :, sl] = acc[k] + b2[k]


@functools.partial(jax.jit, static_argnames=("max_tile_b",))
def reinforce_agent_forward(obs, params, max_tile_b=MAX_TILE_B):
    """obs: (B, OBS_DIM) f32. Returns (mu: (B, ACT_DIM), std: (ACT_DIM,))."""
    w1, b1, w2, b2, log_std = params
    std = jnp.maximum(jnp.exp(log_std.astype(jnp.float32)), jnp.float32(1e-4))

    B = obs.shape[0]
    if B == 0:  # trace-time guard: avoid an ill-formed grid=(0,) pallas_call
        return jnp.zeros((0, ACT_DIM), jnp.float32), std

    # Tile selection: multiples of BATCH_ALIGN; cap at max_tile_b; once the
    # batch spans >= 2 alignment units aim for >= 2 grid steps so v7x's two
    # TensorCores both get work under dimension_semantics=("parallel",).
    cap = max(BATCH_ALIGN, (int(max_tile_b) // BATCH_ALIGN) * BATCH_ALIGN)
    full = _round_up(B, BATCH_ALIGN)
    if full >= 2 * BATCH_ALIGN:
        tile_b = min(cap, _round_up(-(-full // 2), BATCH_ALIGN))
    else:
        tile_b = full
    Bp = _round_up(B, tile_b)
    W = Bp // SUBLANES
    tile_w = tile_b // SUBLANES

    # Feature-major, batch padded, then split batch -> (sublane, lane) axes.
    # The final reshape is a free (metadata-only) row-major reshape.
    obs_t = jnp.pad(obs.astype(jnp.float32).T, ((0, 0), (0, Bp - B)))  # (3, Bp)
    obs_p = obs_t.reshape(OBS_DIM, SUBLANES, W)

    smem = pl.BlockSpec(memory_space=pltpu.MemorySpace.SMEM)

    mu_p = pl.pallas_call(
        _mu_kernel,
        out_shape=jax.ShapeDtypeStruct((ACT_DIM, SUBLANES, W), jnp.float32),
        grid=(Bp // tile_b,),
        in_specs=[
            pl.BlockSpec((OBS_DIM, SUBLANES, tile_w), lambda i: (0, 0, i)),
            smem,  # w1
            smem,  # b1
            smem,  # w2
            smem,  # b2
        ],
        out_specs=pl.BlockSpec((ACT_DIM, SUBLANES, tile_w), lambda i: (0, 0, i)),
        compiler_params=pltpu.CompilerParams(
            dimension_semantics=("parallel",)),
    )(obs_p,
      w1.astype(jnp.float32), b1.astype(jnp.float32),
      w2.astype(jnp.float32), b2.astype(jnp.float32))

    mu = mu_p.reshape(ACT_DIM, Bp)[:, :B].T                     # (B, ACT_DIM)
    return mu, std


def init_params(key):
    """Deterministic init mimicking torch.nn.Linear default (uniform +/- 1/sqrt(fan_in))."""
    k1, k2, k3, k4 = jax.random.split(key, 4)
    lim1 = 1.0 / jnp.sqrt(jnp.float32(OBS_DIM))
    lim2 = 1.0 / jnp.sqrt(jnp.float32(HIDDEN))
    w1 = jax.random.uniform(k1, (OBS_DIM, HIDDEN), jnp.float32, -lim1, lim1)
    b1 = jax.random.uniform(k2, (HIDDEN,), jnp.float32, -lim1, lim1)
    w2 = jax.random.uniform(k3, (HIDDEN, ACT_DIM), jnp.float32, -lim2, lim2)
    b2 = jax.random.uniform(k4, (ACT_DIM,), jnp.float32, -lim2, lim2)
    log_std = jnp.full((ACT_DIM,), -0.5, jnp.float32)   # matches -0.5 * ones
    return w1, b1, w2, b2, log_std


def _reference(obs, params):
    w1, b1, w2, b2, log_std = params
    hi = jax.lax.Precision.HIGHEST
    h = jnp.maximum(
        jnp.einsum("bi,ij->bj", obs.astype(jnp.float32), w1, precision=hi) + b1, 0.0)
    mu = jnp.einsum("bj,jk->bk", h, w2, precision=hi) + b2
    std = jnp.maximum(jnp.exp(log_std), 1e-4)
    return mu, std


if __name__ == "__main__":
    key = jax.random.PRNGKey(0)
    pkey, k_small, k_big = jax.random.split(key, 3)
    params = init_params(pkey)

    # Small batch (single tile, single chunk).
    obs_small = jax.random.normal(k_small, (2, OBS_DIM), jnp.float32)
    mu, std = reinforce_agent_forward(obs_small, params)
    jax.block_until_ready((mu, std))
    mu_ref, std_ref = _reference(obs_small, params)
    assert mu.shape == (2, ACT_DIM) and std.shape == (ACT_DIM,)
    assert jnp.allclose(mu, mu_ref, rtol=1e-5, atol=1e-5), "mu mismatch (small)"
    assert jnp.allclose(std, std_ref, atol=1e-6), "std mismatch"

    # Larger batch, not a multiple of the tile: exercises the multi-tile grid,
    # the multi-chunk inner loop, and the pad/slice logic.
    B_big = 20000
    obs_big = jax.random.normal(k_big, (B_big, OBS_DIM), jnp.float32)
    mu_b, _ = reinforce_agent_forward(obs_big, params)
    jax.block_until_ready(mu_b)
    mu_bref, _ = _reference(obs_big, params)
    assert mu_b.shape == (B_big, ACT_DIM)
    assert jnp.allclose(mu_b, mu_bref, rtol=1e-5, atol=1e-5), "mu mismatch (big)"

    # Empty-batch guard.
    mu0, std0 = reinforce_agent_forward(jnp.zeros((0, OBS_DIM), jnp.float32), params)
    assert mu0.shape == (0, ACT_DIM) and std0.shape == (ACT_DIM,)

    print("KERNEL_OK")
</pallas_src>

<mosaic_0001>
module attributes {stable_mosaic.version = 11 : i64} {
  func.func @_mu_kernel(%arg0: i32, %arg1: memref<3x8x512xf32, #tpu.memory_space<vmem>>, %arg2: memref<3x6xf32, #tpu.memory_space<smem>>, %arg3: memref<6xf32, #tpu.memory_space<smem>>, %arg4: memref<6x2xf32, #tpu.memory_space<smem>>, %arg5: memref<2xf32, #tpu.memory_space<smem>>, %arg6: memref<2x8x512xf32, #tpu.memory_space<vmem>>) attributes {dimension_semantics = [#tpu.dimension_semantics<parallel>], iteration_bounds = array<i64: 1>, scalar_prefetch = 0 : i64, scratch_operands = 0 : i64, tpu.core_type = #tpu.core_type<tc>, window_params = [{transform_indices = @transform_0, window_bounds = array<i64: 3, 8, 512>}, {transform_indices = @transform_1, window_bounds = array<i64: 3, 6>}, {transform_indices = @transform_2, window_bounds = array<i64: 6>}, {transform_indices = @transform_3, window_bounds = array<i64: 6, 2>}, {transform_indices = @transform_4, window_bounds = array<i64: 2>}, {transform_indices = @transform_5, window_bounds = array<i64: 2, 8, 512>}]} {
    %c0 = arith.constant 0 : index
    %c0_0 = arith.constant 0 : index
    %0 = memref.load %arg2[%c0, %c0_0] : memref<3x6xf32, #tpu.memory_space<smem>>
    %c0_1 = arith.constant 0 : index
    %c1 = arith.constant 1 : index
    %1 = memref.load %arg2[%c0_1, %c1] : memref<3x6xf32, #tpu.memory_space<smem>>
    %c0_2 = arith.constant 0 : index
    %c2 = arith.constant 2 : index
    %2 = memref.load %arg2[%c0_2, %c2] : memref<3x6xf32, #tpu.memory_space<smem>>
    %c0_3 = arith.constant 0 : index
    %c3 = arith.constant 3 : index
    %3 = memref.load %arg2[%c0_3, %c3] : memref<3x6xf32, #tpu.memory_space<smem>>
    %c0_4 = arith.constant 0 : index
    %c4 = arith.constant 4 : index
    %4 = memref.load %arg2[%c0_4, %c4] : memref<3x6xf32, #tpu.memory_space<smem>>
    %c0_5 = arith.constant 0 : index
    %c5 = arith.constant 5 : index
    %5 = memref.load %arg2[%c0_5, %c5] : memref<3x6xf32, #tpu.memory_space<smem>>
    %c1_6 = arith.constant 1 : index
    %c0_7 = arith.constant 0 : index
    %6 = memref.load %arg2[%c1_6, %c0_7] : memref<3x6xf32, #tpu.memory_space<smem>>
    %c1_8 = arith.constant 1 : index
    %c1_9 = arith.constant 1 : index
    %7 = memref.load %arg2[%c1_8, %c1_9] : memref<3x6xf32, #tpu.memory_space<smem>>
    %c1_10 = arith.constant 1 : index
    %c2_11 = arith.constant 2 : index
    %8 = memref.load %arg2[%c1_10, %c2_11] : memref<3x6xf32, #tpu.memory_space<smem>>
    %c1_12 = arith.constant 1 : index
    %c3_13 = arith.constant 3 : index
    %9 = memref.load %arg2[%c1_12, %c3_13] : memref<3x6xf32, #tpu.memory_space<smem>>
    %c1_14 = arith.constant 1 : index
    %c4_15 = arith.constant 4 : index
    %10 = memref.load %arg2[%c1_14, %c4_15] : memref<3x6xf32, #tpu.memory_space<smem>>
    %c1_16 = arith.constant 1 : index
    %c5_17 = arith.constant 5 : index
    %11 = memref.load %arg2[%c1_16, %c5_17] : memref<3x6xf32, #tpu.memory_space<smem>>
    %c2_18 = arith.constant 2 : index
    %c0_19 = arith.constant 0 : index
    %12 = memref.load %arg2[%c2_18, %c0_19] : memref<3x6xf32, #tpu.memory_space<smem>>
    %c2_20 = arith.constant 2 : index
    %c1_21 = arith.constant 1 : index
    %13 = memref.load %arg2[%c2_20, %c1_21] : memref<3x6xf32, #tpu.memory_space<smem>>
    %c2_22 = arith.constant 2 : index
    %c2_23 = arith.constant 2 : index
    %14 = memref.load %arg2[%c2_22, %c2_23] : memref<3x6xf32, #tpu.memory_space<smem>>
    %c2_24 = arith.constant 2 : index
    %c3_25 = arith.constant 3 : index
    %15 = memref.load %arg2[%c2_24, %c3_25] : memref<3x6xf32, #tpu.memory_space<smem>>
    %c2_26 = arith.constant 2 : index
    %c4_27 = arith.constant 4 : index
    %16 = memref.load %arg2[%c2_26, %c4_27] : memref<3x6xf32, #tpu.memory_space<smem>>
    %c2_28 = arith.constant 2 : index
    %c5_29 = arith.constant 5 : index
    %17 = memref.load %arg2[%c2_28, %c5_29] : memref<3x6xf32, #tpu.memory_space<smem>>
    %c0_30 = arith.constant 0 : index
    %18 = memref.load %arg3[%c0_30] : memref<6xf32, #tpu.memory_space<smem>>
    %c1_31 = arith.constant 1 : index
    %19 = memref.load %arg3[%c1_31] : memref<6xf32, #tpu.memory_space<smem>>
    %c2_32 = arith.constant 2 : index
    %20 = memref.load %arg3[%c2_32] : memref<6xf32, #tpu.memory_space<smem>>
    %c3_33 = arith.constant 3 : index
    %21 = memref.load %arg3[%c3_33] : memref<6xf32, #tpu.memory_space<smem>>
    %c4_34 = arith.constant 4 : index
    %22 = memref.load %arg3[%c4_34] : memref<6xf32, #tpu.memory_space<smem>>
    %c5_35 = arith.constant 5 : index
    %23 = memref.load %arg3[%c5_35] : memref<6xf32, #tpu.memory_space<smem>>
    %c0_36 = arith.constant 0 : index
    %c0_37 = arith.constant 0 : index
    %24 = memref.load %arg4[%c0_36, %c0_37] : memref<6x2xf32, #tpu.memory_space<smem>>
    %c0_38 = arith.constant 0 : index
    %c1_39 = arith.constant 1 : index
    %25 = memref.load %arg4[%c0_38, %c1_39] : memref<6x2xf32, #tpu.memory_space<smem>>
    %c1_40 = arith.constant 1 : index
    %c0_41 = arith.constant 0 : index
    %26 = memref.load %arg4[%c1_40, %c0_41] : memref<6x2xf32, #tpu.memory_space<smem>>
    %c1_42 = arith.constant 1 : index
    %c1_43 = arith.constant 1 : index
    %27 = memref.load %arg4[%c1_42, %c1_43] : memref<6x2xf32, #tpu.memory_space<smem>>
    %c2_44 = arith.constant 2 : index
    %c0_45 = arith.constant 0 : index
    %28 = memref.load %arg4[%c2_44, %c0_45] : memref<6x2xf32, #tpu.memory_space<smem>>
    %c2_46 = arith.constant 2 : index
    %c1_47 = arith.constant 1 : index
    %29 = memref.load %arg4[%c2_46, %c1_47] : memref<6x2xf32, #tpu.memory_space<smem>>
    %c3_48 = arith.constant 3 : index
    %c0_49 = arith.constant 0 : index
    %30 = memref.load %arg4[%c3_48, %c0_49] : memref<6x2xf32, #tpu.memory_space<smem>>
    %c3_50 = arith.constant 3 : index
    %c1_51 = arith.constant 1 : index
    %31 = memref.load %arg4[%c3_50, %c1_51] : memref<6x2xf32, #tpu.memory_space<smem>>
    %c4_52 = arith.constant 4 : index
    %c0_53 = arith.constant 0 : index
    %32 = memref.load %arg4[%c4_52, %c0_53] : memref<6x2xf32, #tpu.memory_space<smem>>
    %c4_54 = arith.constant 4 : index
    %c1_55 = arith.constant 1 : index
    %33 = memref.load %arg4[%c4_54, %c1_55] : memref<6x2xf32, #tpu.memory_space<smem>>
    %c5_56 = arith.constant 5 : index
    %c0_57 = arith.constant 0 : index
    %34 = memref.load %arg4[%c5_56, %c0_57] : memref<6x2xf32, #tpu.memory_space<smem>>
    %c5_58 = arith.constant 5 : index
    %c1_59 = arith.constant 1 : index
    %35 = memref.load %arg4[%c5_58, %c1_59] : memref<6x2xf32, #tpu.memory_space<smem>>
    %c0_60 = arith.constant 0 : index
    %36 = memref.load %arg5[%c0_60] : memref<2xf32, #tpu.memory_space<smem>>
    %c1_61 = arith.constant 1 : index
    %37 = memref.load %arg5[%c1_61] : memref<2xf32, #tpu.memory_space<smem>>
    %c0_i32 = arith.constant 0 : i32
    %c1_i32 = arith.constant 1 : i32
    %38 = arith.muli %c0_i32, %c1_i32 : i32
    %c0_i32_62 = arith.constant 0 : i32
    %39 = arith.addi %c0_i32_62, %38 : i32
    %c512_i32 = arith.constant 512 : i32
    %40 = arith.muli %39, %c512_i32 : i32
    %41 = tpu.assume_multiple %40, 512 : i32
    %c0_63 = arith.constant 0 : index
    %c0_64 = arith.constant 0 : index
    %42 = arith.index_cast %41 : i32 to index
    %43 = vector.load %arg1[%c0_63, %c0_64, %42] : memref<3x8x512xf32, #tpu.memory_space<vmem>>, vector<1x8x512xf32>
    %44 = vector.shape_cast %43 : vector<1x8x512xf32> to vector<8x512xf32>
    %c1_65 = arith.constant 1 : index
    %c0_66 = arith.constant 0 : index
    %45 = arith.index_cast %41 : i32 to index
    %46 = vector.load %arg1[%c1_65, %c0_66, %45] : memref<3x8x512xf32, #tpu.memory_space<vmem>>, vector<1x8x512xf32>
    %47 = vector.shape_cast %46 : vector<1x8x512xf32> to vector<8x512xf32>
    %c2_67 = arith.constant 2 : index
    %c0_68 = arith.constant 0 : index
    %48 = arith.index_cast %41 : i32 to index
    %49 = vector.load %arg1[%c2_67, %c0_68, %48] : memref<3x8x512xf32, #tpu.memory_space<vmem>>, vector<1x8x512xf32>
    %50 = vector.shape_cast %49 : vector<1x8x512xf32> to vector<8x512xf32>
    %51 = vector.broadcast %0 : f32 to vector<8x512xf32>
    %52 = arith.mulf %44, %51 : vector<8x512xf32>
    %53 = vector.broadcast %6 : f32 to vector<8x512xf32>
    %54 = arith.mulf %47, %53 : vector<8x512xf32>
    %55 = arith.addf %52, %54 : vector<8x512xf32>
    %56 = vector.broadcast %12 : f32 to vector<8x512xf32>
    %57 = arith.mulf %50, %56 : vector<8x512xf32>
    %58 = arith.addf %55, %57 : vector<8x512xf32>
    %59 = vector.broadcast %18 : f32 to vector<8x512xf32>
    %60 = arith.addf %58, %59 : vector<8x512xf32>
    %cst = arith.constant 0.000000e+00 : f32
    %61 = vector.broadcast %cst : f32 to vector<8x512xf32>
    %62 = arith.maximumf %60, %61 : vector<8x512xf32>
    %63 = vector.broadcast %24 : f32 to vector<8x512xf32>
    %64 = arith.mulf %62, %63 : vector<8x512xf32>
    %65 = vector.broadcast %25 : f32 to vector<8x512xf32>
    %66 = arith.mulf %62, %65 : vector<8x512xf32>
    %67 = vector.broadcast %1 : f32 to vector<8x512xf32>
    %68 = arith.mulf %44, %67 : vector<8x512xf32>
    %69 = vector.broadcast %7 : f32 to vector<8x512xf32>
    %70 = arith.mulf %47, %69 : vector<8x512xf32>
    %71 = arith.addf %68, %70 : vector<8x512xf32>
    %72 = vector.broadcast %13 : f32 to vector<8x512xf32>
    %73 = arith.mulf %50, %72 : vector<8x512xf32>
    %74 = arith.addf %71, %73 : vector<8x512xf32>
    %75 = vector.broadcast %19 : f32 to vector<8x512xf32>
    %76 = arith.addf %74, %75 : vector<8x512xf32>
    %cst_69 = arith.constant 0.000000e+00 : f32
    %77 = vector.broadcast %cst_69 : f32 to vector<8x512xf32>
    %78 = arith.maximumf %76, %77 : vector<8x512xf32>
    %79 = vector.broadcast %26 : f32 to vector<8x512xf32>
    %80 = arith.mulf %78, %79 : vector<8x512xf32>
    %81 = arith.addf %64, %80 : vector<8x512xf32>
    %82 = vector.broadcast %27 : f32 to vector<8x512xf32>
    %83 = arith.mulf %78, %82 : vector<8x512xf32>
    %84 = arith.addf %66, %83 : vector<8x512xf32>
    %85 = vector.broadcast %2 : f32 to vector<8x512xf32>
    %86 = arith.mulf %44, %85 : vector<8x512xf32>
    %87 = vector.broadcast %8 : f32 to vector<8x512xf32>
    %88 = arith.mulf %47, %87 : vector<8x512xf32>
    %89 = arith.addf %86, %88 : vector<8x512xf32>
    %90 = vector.broadcast %14 : f32 to vector<8x512xf32>
    %91 = arith.mulf %50, %90 : vector<8x512xf32>
    %92 = arith.addf %89, %91 : vector<8x512xf32>
    %93 = vector.broadcast %20 : f32 to vector<8x512xf32>
    %94 = arith.addf %92, %93 : vector<8x512xf32>
    %cst_70 = arith.constant 0.000000e+00 : f32
    %95 = vector.broadcast %cst_70 : f32 to vector<8x512xf32>
    %96 = arith.maximumf %94, %95 : vector<8x512xf32>
    %97 = vector.broadcast %28 : f32 to vector<8x512xf32>
    %98 = arith.mulf %96, %97 : vector<8x512xf32>
    %99 = arith.addf %81, %98 : vector<8x512xf32>
    %100 = vector.broadcast %29 : f32 to vector<8x512xf32>
    %101 = arith.mulf %96, %100 : vector<8x512xf32>
    %102 = arith.addf %84, %101 : vector<8x512xf32>
    %103 = vector.broadcast %3 : f32 to vector<8x512xf32>
    %104 = arith.mulf %44, %103 : vector<8x512xf32>
    %105 = vector.broadcast %9 : f32 to vector<8x512xf32>
    %106 = arith.mulf %47, %105 : vector<8x512xf32>
    %107 = arith.addf %104, %106 : vector<8x512xf32>
    %108 = vector.broadcast %15 : f32 to vector<8x512xf32>
    %109 = arith.mulf %50, %108 : vector<8x512xf32>
    %110 = arith.addf %107, %109 : vector<8x512xf32>
    %111 = vector.broadcast %21 : f32 to vector<8x512xf32>
    %112 = arith.addf %110, %111 : vector<8x512xf32>
    %cst_71 = arith.constant 0.000000e+00 : f32
    %113 = vector.broadcast %cst_71 : f32 to vector<8x512xf32>
    %114 = arith.maximumf %112, %113 : vector<8x512xf32>
    %115 = vector.broadcast %30 : f32 to vector<8x512xf32>
    %116 = arith.mulf %114, %115 : vector<8x512xf32>
    %117 = arith.addf %99, %116 : vector<8x512xf32>
    %118 = vector.broadcast %31 : f32 to vector<8x512xf32>
    %119 = arith.mulf %114, %118 : vector<8x512xf32>
    %120 = arith.addf %102, %119 : vector<8x512xf32>
    %121 = vector.broadcast %4 : f32 to vector<8x512xf32>
    %122 = arith.mulf %44, %121 : vector<8x512xf32>
    %123 = vector.broadcast %10 : f32 to vector<8x512xf32>
    %124 = arith.mulf %47, %123 : vector<8x512xf32>
    %125 = arith.addf %122, %124 : vector<8x512xf32>
    %126 = vector.broadcast %16 : f32 to vector<8x512xf32>
    %127 = arith.mulf %50, %126 : vector<8x512xf32>
    %128 = arith.addf %125, %127 : vector<8x512xf32>
    %129 = vector.broadcast %22 : f32 to vector<8x512xf32>
    %130 = arith.addf %128, %129 : vector<8x512xf32>
    %cst_72 = arith.constant 0.000000e+00 : f32
    %131 = vector.broadcast %cst_72 : f32 to vector<8x512xf32>
    %132 = arith.maximumf %130, %131 : vector<8x512xf32>
    %133 = vector.broadcast %32 : f32 to vector<8x512xf32>
    %134 = arith.mulf %132, %133 : vector<8x512xf32>
    %135 = arith.addf %117, %134 : vector<8x512xf32>
    %136 = vector.broadcast %33 : f32 to vector<8x512xf32>
    %137 = arith.mulf %132, %136 : vector<8x512xf32>
    %138 = arith.addf %120, %137 : vector<8x512xf32>
    %139 = vector.broadcast %5 : f32 to vector<8x512xf32>
    %140 = arith.mulf %44, %139 : vector<8x512xf32>
    %141 = vector.broadcast %11 : f32 to vector<8x512xf32>
    %142 = arith.mulf %47, %141 : vector<8x512xf32>
    %143 = arith.addf %140, %142 : vector<8x512xf32>
    %144 = vector.broadcast %17 : f32 to vector<8x512xf32>
    %145 = arith.mulf %50, %144 : vector<8x512xf32>
    %146 = arith.addf %143, %145 : vector<8x512xf32>
    %147 = vector.broadcast %23 : f32 to vector<8x512xf32>
    %148 = arith.addf %146, %147 : vector<8x512xf32>
    %cst_73 = arith.constant 0.000000e+00 : f32
    %149 = vector.broadcast %cst_73 : f32 to vector<8x512xf32>
    %150 = arith.maximumf %148, %149 : vector<8x512xf32>
    %151 = vector.broadcast %34 : f32 to vector<8x512xf32>
    %152 = arith.mulf %150, %151 : vector<8x512xf32>
    %153 = arith.addf %135, %152 : vector<8x512xf32>
    %154 = vector.broadcast %35 : f32 to vector<8x512xf32>
    %155 = arith.mulf %150, %154 : vector<8x512xf32>
    %156 = arith.addf %138, %155 : vector<8x512xf32>
    %157 = vector.broadcast %36 : f32 to vector<8x512xf32>
    %158 = arith.addf %153, %157 : vector<8x512xf32>
    %c0_74 = arith.constant 0 : index
    %c0_75 = arith.constant 0 : index
    %159 = arith.index_cast %41 : i32 to index
    %160 = vector.load %arg6[%c0_74, %c0_75, %159] : memref<2x8x512xf32, #tpu.memory_space<vmem>>, vector<1x8x512xf32>
    %161 = vector.shape_cast %160 : vector<1x8x512xf32> to vector<8x512xf32>
    %162 = vector.shape_cast %158 : vector<8x512xf32> to vector<1x8x512xf32>
    tpu.vector_store %arg6[%c0_74, %c0_75, %159], %162 {strides = array<i32>} : memref<2x8x512xf32, #tpu.memory_space<vmem>>, vector<1x8x512xf32>,
    %163 = vector.broadcast %37 : f32 to vector<8x512xf32>
    %164 = arith.addf %156, %163 : vector<8x512xf32>
    %c1_76 = arith.constant 1 : index
    %c0_77 = arith.constant 0 : index
    %165 = arith.index_cast %41 : i32 to index
    %166 = vector.load %arg6[%c1_76, %c0_77, %165] : memref<2x8x512xf32, #tpu.memory_space<vmem>>, vector<1x8x512xf32>
    %167 = vector.shape_cast %166 : vector<1x8x512xf32> to vector<8x512xf32>
    %168 = vector.shape_cast %164 : vector<8x512xf32> to vector<1x8x512xf32>
    tpu.vector_store %arg6[%c1_76, %c0_77, %165], %168 {strides = array<i32>} : memref<2x8x512xf32, #tpu.memory_space<vmem>>, vector<1x8x512xf32>,
    %c1_i32_78 = arith.constant 1 : i32
    return
  }
  func.func @transform_0(%arg0: i32) -> (i32, i32, i32) {
    %c0_i32 = arith.constant 0 : i32
    %c0_i32_0 = arith.constant 0 : i32
    %c0_i32_1 = arith.constant 0 : i32
    return %c0_i32, %c0_i32_0, %arg0 : i32, i32, i32
  }
  func.func @transform_1(%arg0: i32) -> (i32, i32) {
    %c0_i32 = arith.constant 0 : i32
    %c0_i32_0 = arith.constant 0 : i32
    %c0_i32_1 = arith.constant 0 : i32
    return %c0_i32, %c0_i32_0 : i32, i32
  }
  func.func @transform_2(%arg0: i32) -> i32 {
    %c0_i32 = arith.constant 0 : i32
    %c0_i32_0 = arith.constant 0 : i32
    return %c0_i32 : i32
  }
  func.func @transform_3(%arg0: i32) -> (i32, i32) {
    %c0_i32 = arith.constant 0 : i32
    %c0_i32_0 = arith.constant 0 : i32
    %c0_i32_1 = arith.constant 0 : i32
    return %c0_i32, %c0_i32_0 : i32, i32
  }
  func.func @transform_4(%arg0: i32) -> i32 {
    %c0_i32 = arith.constant 0 : i32
    %c0_i32_0 = arith.constant 0 : i32
    return %c0_i32 : i32
  }
  func.func @transform_5(%arg0: i32) -> (i32, i32, i32) {
    %c0_i32 = arith.constant 0 : i32
    %c0_i32_0 = arith.constant 0 : i32
    %c0_i32_1 = arith.constant 0 : i32
    return %c0_i32, %c0_i32_0, %arg0 : i32, i32, i32
  }
}

</mosaic_0001>

<bundles_post_ra>
// kernel: reinforce_agent_forward.1
= control target key start
LH: loop header
LB: loop body
LE: loop exit
PB: predicated region body
PF: predicated region fallthrough
CT: control target
= control target key end

     0   :  { %10 = vsyncpa [#allocation3], 0  ;;  %s1119_s0 = inlined_call_operand.vmem [shape: f32[3,8,512], index: 0, kind: input, shape index: {}]   ;;  %s1120_s1 = inlined_call_operand.vmem [shape: f32[3,6], index: 1, kind: input, shape index: {}]   ;;  %s1121_s2 = inlined_call_operand.vmem [shape: f32[6], index: 2, kind: input, shape index: {}]   ;;  %s1122_s3 = inlined_call_operand.vmem [shape: f32[6,2], index: 3, kind: input, shape index: {}]   ;;  %s1123_s4 = inlined_call_operand.vmem [shape: f32[2], index: 4, kind: input, shape index: {}]   ;;  %s1124_s5 = inlined_call_operand.vmem [shape: f32[2,8,512], index: 5, kind: output, shape index: {}]  }
   0x1   :  { %11 = vsyncpa [#allocation5], 0  ;;  %s31_s20 = sshll.u32 %s1121_s2, 4  ;;  %s32_s20 = int_to_ptr.vmem [resolvable:$true] %s31_s20 }
   0x2   :  { %12 = vsyncpa [#allocation8], 0  ;;  %s21_s23 = sshll.u32 %s1120_s1, 4  ;;  %s496_s24 = scalar_lea.vmem %s32_s20, 16  ;;  %s22_s23 = int_to_ptr.vmem [resolvable:$true] %s21_s23 }
   0x3   :  { %p497_p0 = scmp.ne.s32.totalorder %s32_s20, %s496_s24  ;;  %p501_p1 = scmp.lt.s32.totalorder %s32_s20, %s32_s20 }
   0x4   :  { %p502_p2 = scmp.lt.s32.totalorder %s496_s24, %s496_s24 }
   0x6   :  { %p503_p3 = por %p502_p2, %p501_p1 }
   0x8   :  { %p504_p4 = pnand %p503_p3, %p497_p0 }
   0xa   :  { %507 = shalt.err (!%p504_p4)
}
   0xb   :  { %s550_s25 = smov [#allocation4]   ;;  %s508_s26 = scalar_lea.vmem %s22_s23, 64 }
   0xc   :  { %34 = dma.vmem_to_smem %s32_s20, 16, %s550_s25, [#allocation5]  }
   0xd   :  { %p509_p5 = scmp.ne.s32.totalorder %s22_s23, %s508_s26  ;;  %p513_p6 = scmp.lt.s32.totalorder %s22_s23, %s22_s23 }
   0xe   :  { %p514_p7 = scmp.lt.s32.totalorder %s508_s26, %s508_s26 }
  0x10   :  { %p515_p8 = por %p514_p7, %p513_p6 }
  0x12   :  { %p516_p9 = pnand %p515_p8, %p509_p5 }
  0x14   :  { %519 = shalt.err (!%p516_p9)
}
  0x15   :  { %s551_s2 = smov [#allocation2]   ;;  %s41_s28 = sshll.u32 %s1122_s3, 4  ;;  %s42_s28 = int_to_ptr.vmem [resolvable:$true] %s41_s28 }
  0x16   :  { %24 = dma.vmem_to_smem %s22_s23, 64, %s551_s2, [#allocation3]  }
  0x17   :  { %s51_s6 = sshll.u32 %s1123_s4, 4  ;;  %s520_s7 = scalar_lea.vmem %s42_s28, 128  ;;  %s52_s6 = int_to_ptr.vmem [resolvable:$true] %s51_s6 }
  0x18   :  { %p521_p10 = scmp.ne.s32.totalorder %s42_s28, %s520_s7  ;;  %p525_p11 = scmp.lt.s32.totalorder %s42_s28, %s42_s28 }
  0x19   :  { %p526_p12 = scmp.lt.s32.totalorder %s520_s7, %s520_s7 }
  0x1b   :  { %p527_p13 = por %p526_p12, %p525_p11 }
  0x1d   :  { %p528_p0 = pnand %p527_p13, %p521_p10 }
  0x1f   :  { %531 = shalt.err (!%p528_p0)
}
  0x20   :  { %s552_s8 = smov [#allocation6]   ;;  %s532_s9 = scalar_lea.vmem %s52_s6, 16 }
  0x21   :  { %44 = dma.vmem_to_smem %s42_s28, 128, %s552_s8, [#allocation5]  }
  0x22   :  { %p533_p1 = scmp.ne.s32.totalorder %s52_s6, %s532_s9  ;;  %p537_p2 = scmp.lt.s32.totalorder %s52_s6, %s52_s6 }
  0x23   :  { %p538_p3 = scmp.lt.s32.totalorder %s532_s9, %s532_s9 }
  0x25   :  { %p539_p4 = por %p538_p3, %p537_p2 }
  0x27   :  { %p540_p5 = pnand %p539_p4, %p533_p1 }
  0x29   :  { %543 = shalt.err (!%p540_p5)
}
  0x2a   :  { %s553_s3 = smov [#allocation7]  }
  0x2b   :  { %54 = dma.vmem_to_smem %s52_s6, 16, %s553_s3, [#allocation8]  }
  0x2c   :  { %544 = dma.done.wait [#allocation3], 64  }
  0x2d   :  { %545 = vsyncadd [#allocation3], 4294967232 }
  0x2e   :  { %546 = dma.done.wait [#allocation5], 144  }
  0x2f   :  { %547 = vsyncadd [#allocation5], 4294967152 }
  0x30   :  { %548 = dma.done.wait [#allocation8], 16  }
  0x31   :  { %549 = vsyncadd [#allocation8], 4294967280 }
  0x32   :  { %67 = sfence }
  0x33   :  { %s68_s4 = sld [smem:[#allocation2]]  ;;  %s446_s10 = sld [smem:[#allocation2 + $0x1]]  ;;  %v106_v0 = vld [vmem:[%s1119_s0] sm:$0xff] }
  0x34   :  { %s447_s11 = sld [smem:[#allocation2 + $0x2]]  ;;  %s448_s12 = sld [smem:[#allocation2 + $0x3]]  ;;  %v622_v3 = vld [vmem:[%s1119_s0 + $0x20] sm:$0xff] }
  0x35   :  { %s449_s13 = sld [smem:[#allocation2 + $0x4]]  ;;  %s450_s14 = sld [smem:[#allocation2 + $0x5]]  ;;  %v657_v16 = vld [vmem:[%s1119_s0 + $0x40] sm:$0xff] }
  0x36   :  { %s451_s15 = sld [smem:[#allocation2 + $0x80]]  ;;  %s452_s16 = sld [smem:[#allocation2 + $0x81]] }
  0x37   :  { %s596_s17 = sld [smem:[#allocation2 + $0x82]]  ;;  %s598_s18 = sld [smem:[#allocation2 + $0x83]] }
  0x38   :  { %s603_s21 = sld [smem:[#allocation2 + $0x84]]  ;;  %s605_s22 = sld [smem:[#allocation2 + $0x85]] }
  0x39   :  { %s607_s23 = sld [smem:[#allocation2 + $0x100]]  ;;  %s609_s24 = sld [smem:[#allocation2 + $0x101]]  ;;  %v611_v1 = vstv %s68_s4  ;;  %v613_v2 = vstv %s446_s10 }
  0x3a   :  { %s615_s25 = sld [smem:[#allocation2 + $0x102]]  ;;  %s617_s26 = sld [smem:[#allocation2 + $0x103]]  ;;  %v125_v4 = vmul.f32 %v611_v1, %v106_v0  ;;  %v167_v5 = vmul.f32 %v613_v2, %v106_v0  ;;  %v626_v6 = vstv %s447_s11  ;;  %v628_v7 = vstv %s448_s12 }
  0x3b   :  { %s630_s27 = sld [smem:[#allocation2 + $0x104]]  ;;  %v217_v8 = vmul.f32 %v626_v6, %v106_v0  ;;  %v267_v9 = vmul.f32 %v628_v7, %v106_v0  ;;  %v634_v10 = vstv %s449_s13  ;;  %v636_v11 = vstv %s450_s14  ;;  %s638_s28 = sld [smem:[#allocation4]] }
  0x3c   :  { %s640_s29 = sld [smem:[#allocation4 + $0x1]]  ;;  %v642_v12 = vstv %s451_s15  ;;  %v644_v13 = vstv %s452_s16  ;;  %v317_v14 = vmul.f32 %v634_v10, %v106_v0  ;;  %v648_v15 = vmul.f32 %v636_v11, %v106_v0  ;;  %s650_s30 = sld [smem:[#allocation4 + $0x2]] }
  0x3d   :  { %s652_s6 = sld [smem:[#allocation4 + $0x3]]  ;;  %v130_v17 = vmul.f32 %v622_v3, %v642_v12  ;;  %v172_v18 = vmul.f32 %v622_v3, %v644_v13  ;;  %v664_v19 = vstv %s596_s17  ;;  %v667_v20 = vstv %s598_s18  ;;  %s669_s9 = sld [smem:[#allocation4 + $0x4]] }
  0x3e   :  { %v222_v21 = vmul.f32 %v622_v3, %v664_v19  ;;  %v272_v22 = vmul.f32 %v622_v3, %v667_v20  ;;  %v676_v23 = vstv %s603_s21  ;;  %v679_v24 = vstv %s605_s22  ;;  %s681_s3 = sld [smem:[#allocation6]]  ;;  %s702_s12 = sld [smem:[#allocation2 + $0x105]] }
  0x3f   :  { %s683_s4 = sld [smem:[#allocation6 + $0x80]]  ;;  %v134_v25 = vadd.f32 %v130_v17, %v125_v4  ;;  %v686_v26 = vstv %s607_s23  ;;  %v176_v27 = vadd.f32 %v172_v18, %v167_v5  ;;  %v689_v28 = vstv %s609_s24  ;;  %s713_s14 = sld [smem:[#allocation4 + $0x5]]  ;;  %v481_v17 = vld [vmem:[%s1119_s0 + $0x28] sm:$0xff] }
  0x40   :  { %s691_s10 = sld [smem:[#allocation6 + $0x100]]  ;;  %v139_v29 = vmul.f32 %v657_v16, %v686_v26  ;;  %v181_v30 = vmul.f32 %v657_v16, %v689_v28  ;;  %v226_v31 = vadd.f32 %v222_v21, %v217_v8  ;;  %v700_v32 = vstv %s615_s25  ;;  %s479_s17 = sld [smem:[#allocation7 + $0x1]] }
  0x41   :  { %s693_s11 = sld [smem:[#allocation6 + $0x180]]  ;;  %v231_v33 = vmul.f32 %v657_v16, %v700_v32  ;;  %v276_v34 = vadd.f32 %v272_v22, %v267_v9  ;;  %v709_v35 = vstv %s617_s26  ;;  %v322_v36 = vmul.f32 %v622_v3, %v676_v23 }
  0x42   :  { %s704_s13 = sld [smem:[#allocation6 + $0x200]]  ;;  %v143_v37 = vadd.f32 %v139_v29, %v134_v25  ;;  %v716_v38 = vstv %s638_s28  ;;  %v185_v39 = vadd.f32 %v181_v30, %v176_v27  ;;  %v719_v40 = vstv %s640_s29  ;;  %v485_v25 = vld [vmem:[%s1119_s0 + $0x48] sm:$0xff] }
  0x43   :  { %s721_s15 = sld [smem:[#allocation6 + $0x280]]  ;;  %v235_v41 = vadd.f32 %v231_v33, %v226_v31  ;;  %v726_v42 = vstv %s650_s30  ;;  %v281_v43 = vmul.f32 %v657_v16, %v709_v35  ;;  %v731_v44 = vstv %s652_s6 }
  0x44   :  { %s723_s16 = sld [smem:[#allocation7]]  ;;  %v734_v45 = vadd.f32 %v716_v38, %v143_v37  ;;  %v737_v46 = vadd.f32 %v719_v40, %v185_v39  ;;  %v326_v47 = vadd.f32 %v322_v36, %v317_v14  ;;  %v740_v48 = vstv %s630_s27  ;;  %v107_v14 = vld [vmem:[%s1119_s0 + $0x8] sm:$0xff] }
  0x45   :  { %v743_v49 = vstv %s681_s3  ;;  %v746_v50 = vstv %s683_s4  ;;  %v749_v51 = vadd.f32 %v726_v42, %v235_v41  ;;  %v285_v52 = vadd.f32 %v281_v43, %v276_v34  ;;  %s995_s4 = sld [smem:[#allocation6 + $0x1]] }
  0x46   :  { %v1134_v53 = vmax.f32 %v734_v45, 0.0  ;;  %v1132_v54 = vmax.f32 %v737_v46, 0.0  ;;  %v754_v55 = vstv %s691_s10  ;;  %v331_v59 = vmul.f32 %v657_v16, %v740_v48  ;;  %s1003_s10 = sld [smem:[#allocation6 + $0x81]] }
  0x47   :  { %v757_v56 = vstv %s693_s11  ;;  %v1128_v57 = vmax.f32 %v749_v51, 0.0  ;;  %v761_v58 = vadd.f32 %v731_v44, %v285_v52  ;;  %v766_v60 = vstv %s669_s9  ;;  %s1017_s11 = sld [smem:[#allocation6 + $0x101]] }
  0x48   :  { %v157_v61 = vmul.f32 %v743_v49, %v1134_v53  ;;  %v199_v62 = vmul.f32 %v746_v50, %v1132_v54  ;;  %v775_v63 = vstv %s704_s13  ;;  %v372_v0 = vmul.f32 %v622_v3, %v679_v24  ;;  %s1031_s13 = sld [smem:[#allocation6 + $0x201]] }
  0x49   :  { %v249_v4 = vmul.f32 %v754_v55, %v1128_v57  ;;  %v1127_v5 = vmax.f32 %v761_v58, 0.0  ;;  %v335_v8 = vadd.f32 %v331_v59, %v326_v47  ;;  %v784_v9 = vstv %s702_s12  ;;  %s1019_s12 = sld [smem:[#allocation6 + $0x181]] }
  0x4a   :  { %v203_v18 = vadd.f32 %v199_v62, %v157_v61  ;;  %v376_v3 = vadd.f32 %v372_v0, %v648_v15  ;;  %v381_v21 = vmul.f32 %v657_v16, %v784_v9  ;;  %v796_v22 = vstv %s713_s14  ;;  %s1040_s14 = sld [smem:[#allocation6 + $0x281]] }
  0x4b   :  { %v299_v27 = vmul.f32 %v757_v56, %v1127_v5  ;;  %v805_v29 = vadd.f32 %v766_v60, %v335_v8  ;;  %v808_v30 = vstv %s721_s15  ;;  %v811_v31 = vstv %s723_s16 }
  0x4c   :  { %v253_v15 = vadd.f32 %v249_v4, %v203_v18  ;;  %v385_v33 = vadd.f32 %v381_v21, %v376_v3  ;;  %v126_v16 = vmul.f32 %v611_v1, %v107_v14  ;;  %v131_v34 = vmul.f32 %v481_v17, %v642_v12 }
  0x4d   :  { %v1125_v36 = vmax.f32 %v805_v29, 0.0  ;;  %v140_v37 = vmul.f32 %v485_v25, %v686_v26  ;;  %v168_v39 = vmul.f32 %v613_v2, %v107_v14  ;;  %v173_v41 = vmul.f32 %v481_v17, %v644_v13 }
  0x4e   :  { %v303_v43 = vadd.f32 %v299_v27, %v253_v15  ;;  %v820_v47 = vadd.f32 %v796_v22, %v385_v33  ;;  %v135_v52 = vadd.f32 %v131_v34, %v126_v16  ;;  %v182_v59 = vmul.f32 %v485_v25, %v689_v28 }
  0x4f   :  { %v349_v61 = vmul.f32 %v775_v63, %v1125_v36  ;;  %v177_v62 = vadd.f32 %v173_v41, %v168_v39  ;;  %v218_v0 = vmul.f32 %v626_v6, %v107_v14  ;;  %v223_v4 = vmul.f32 %v481_v17, %v664_v19 }
  0x50   :  { %v1126_v8 = vmax.f32 %v820_v47, 0.0  ;;  %v144_v18 = vadd.f32 %v140_v37, %v135_v52  ;;  %v232_v3 = vmul.f32 %v485_v25, %v700_v32  ;;  %v268_v21 = vmul.f32 %v628_v7, %v107_v14 }
  0x51   :  { %v353_v27 = vadd.f32 %v349_v61, %v303_v43  ;;  %v186_v15 = vadd.f32 %v182_v59, %v177_v62  ;;  %v227_v33 = vadd.f32 %v223_v4, %v218_v0  ;;  %v273_v16 = vmul.f32 %v481_v17, %v667_v20 }
  0x52   :  { %v399_v34 = vmul.f32 %v808_v30, %v1126_v8  ;;  %v836_v39 = vadd.f32 %v716_v38, %v144_v18  ;;  %v282_v41 = vmul.f32 %v485_v25, %v709_v35  ;;  %v318_v37 = vmul.f32 %v634_v10, %v107_v14 }
  0x53   :  { %v841_v52 = vadd.f32 %v719_v40, %v186_v15  ;;  %v236_v36 = vadd.f32 %v232_v3, %v227_v33  ;;  %v277_v43 = vadd.f32 %v273_v16, %v268_v21  ;;  %v323_v59 = vmul.f32 %v481_v17, %v676_v23  ;;  %v108_v3 = vld [vmem:[%s1119_s0 + $0x10] sm:$0xff] }
  0x54   :  { %v403_v61 = vadd.f32 %v399_v34, %v353_v27  ;;  %v1130_v62 = vmax.f32 %v836_v39, 0.0  ;;  %v332_v0 = vmul.f32 %v485_v25, %v740_v48  ;;  %v368_v4 = vmul.f32 %v636_v11, %v107_v14  ;;  %v482_v21 = vld [vmem:[%s1119_s0 + $0x30] sm:$0xff] }
  0x55   :  { %v1129_v18 = vmax.f32 %v841_v52, 0.0  ;;  %v849_v8 = vadd.f32 %v726_v42, %v236_v36  ;;  %v286_v5 = vadd.f32 %v282_v41, %v277_v43  ;;  %v327_v57 = vadd.f32 %v323_v59, %v318_v37  ;;  %v860_v27 = vld [vmem:[%s1119_s0 + $0x50] sm:$0xff] }
  0x56   :  { %v417_v14 = vadd.f32 %v811_v31, %v403_v61  ;;  %v158_v36 = vmul.f32 %v743_v49, %v1130_v62  ;;  %v373_v15 = vmul.f32 %v481_v17, %v679_v24  ;;  %v382_v33 = vmul.f32 %v485_v25, %v784_v9 }
  0x57   :  { %v200_v16 = vmul.f32 %v746_v50, %v1129_v18  ;;  %v1131_v34 = vmax.f32 %v849_v8, 0.0  ;;  %v873_v41 = vadd.f32 %v731_v44, %v286_v5  ;;  %v336_v37 = vadd.f32 %v332_v0, %v327_v57 }
  0x58   :  { %421 = vst [vmem:[%s1124_s5] sm:$0xff] %v417_v14  ;;  %v377_v43 = vadd.f32 %v373_v15, %v368_v4  ;;  %v127_v59 = vmul.f32 %v611_v1, %v108_v3  ;;  %v132_v17 = vmul.f32 %v482_v21, %v642_v12  ;;  %v141_v25 = vmul.f32 %v860_v27, %v686_v26 }
  0x59   :  { %1141 = vst [vmem:[#allocation12_spill] sm:$0xff] %v873_v41  ;;  %v204_v61 = vadd.f32 %v200_v16, %v158_v36  ;;  %v250_v18 = vmul.f32 %v754_v55, %v1131_v34  ;;  %v1133_v5 = vmax.f32 %v873_v41, 0.0  ;;  %v887_v57 = vadd.f32 %v766_v60, %v336_v37  ;;  %v943_v41 = vld [vmem:[%s1119_s0 + $0x38] sm:$0xff] }
  0x5a   :  { %v386_v0 = vadd.f32 %v382_v33, %v377_v43  ;;  %v136_v14 = vadd.f32 %v132_v17, %v127_v59  ;;  %v169_v4 = vmul.f32 %v613_v2, %v108_v3  ;;  %v174_v15 = vmul.f32 %v482_v21, %v644_v13 }
  0x5b   :  { %1142 = vst [vmem:[#allocation13_spill] sm:$0xff] %v887_v57  ;;  %v254_v62 = vadd.f32 %v250_v18, %v204_v61  ;;  %v300_v36 = vmul.f32 %v757_v56, %v1133_v5  ;;  %v1135_v16 = vmax.f32 %v887_v57, 0.0  ;;  %v183_v34 = vmul.f32 %v860_v27, %v689_v28 }
  0x5c   :  { %v898_v54 = vadd.f32 %v796_v22, %v386_v0  ;;  %v145_v37 = vadd.f32 %v141_v25, %v136_v14  ;;  %v178_v33 = vadd.f32 %v174_v15, %v169_v4  ;;  %v219_v43 = vmul.f32 %v626_v6, %v108_v3 }
  0x5d   :  { %v304_v59 = vadd.f32 %v300_v36, %v254_v62  ;;  %v350_v18 = vmul.f32 %v775_v63, %v1135_v16  ;;  %v224_v17 = vmul.f32 %v482_v21, %v664_v19  ;;  %v233_v61 = vmul.f32 %v860_v27, %v700_v32 }
  0x5e   :  { %1143 = vst [vmem:[#allocation14_spill] sm:$0xff] %v898_v54  ;;  %v1137_v5 = vmax.f32 %v898_v54, 0.0  ;;  %v909_v53 = vadd.f32 %v716_v38, %v145_v37  ;;  %v187_v0 = vadd.f32 %v183_v34, %v178_v33  ;;  %v269_v25 = vmul.f32 %v628_v7, %v108_v3 }
  0x5f   :  { %v354_v14 = vadd.f32 %v350_v18, %v304_v59  ;;  %v228_v4 = vadd.f32 %v224_v17, %v219_v43  ;;  %v274_v62 = vmul.f32 %v482_v21, %v667_v20  ;;  %v283_v15 = vmul.f32 %v860_v27, %v709_v35  ;;  %v929_v18 = vld [vmem:[%s1119_s0 + $0x18] sm:$0xff] }
  0x60   :  { %v400_v36 = vmul.f32 %v808_v30, %v1137_v5  ;;  %v154_v16 = vmax.f32 %v909_v53, 0.0  ;;  %v920_v57 = vadd.f32 %v719_v40, %v187_v0  ;;  %v319_v34 = vmul.f32 %v634_v10, %v108_v3 }
  0x61   :  { %v237_v37 = vadd.f32 %v233_v61, %v228_v4  ;;  %v278_v33 = vadd.f32 %v274_v62, %v269_v25  ;;  %v324_v43 = vmul.f32 %v482_v21, %v676_v23  ;;  %v333_v59 = vmul.f32 %v860_v27, %v740_v48 }
  0x62   :  { %v404_v17 = vadd.f32 %v400_v36, %v354_v14  ;;  %v159_v0 = vmul.f32 %v743_v49, %v154_v16  ;;  %v1140_v5 = vmax.f32 %v920_v57, 0.0  ;;  %v369_v61 = vmul.f32 %v636_v11, %v108_v3  ;;  %v948_v14 = vld [vmem:[%s1119_s0 + $0x58] sm:$0xff] }
  0x63   :  { %v937_v25 = vadd.f32 %v726_v42, %v237_v37  ;;  %v287_v4 = vadd.f32 %v283_v15, %v278_v33  ;;  %v328_v62 = vadd.f32 %v324_v43, %v319_v34  ;;  %v374_v54 = vmul.f32 %v482_v21, %v679_v24 }
  0x64   :  { %v418_v36 = vadd.f32 %v811_v31, %v404_v17  ;;  %v201_v3 = vmul.f32 %v746_v50, %v1140_v5  ;;  %v383_v15 = vmul.f32 %v860_v27, %v784_v9  ;;  %v128_v21 = vmul.f32 %v611_v1, %v929_v18 }
  0x65   :  { %v246_v34 = vmax.f32 %v937_v25, 0.0  ;;  %v960_v37 = vadd.f32 %v731_v44, %v287_v4  ;;  %v337_v33 = vadd.f32 %v333_v59, %v328_v62  ;;  %v378_v43 = vadd.f32 %v374_v54, %v369_v61 }
  0x66   :  { %422 = vst [vmem:[%s1124_s5 + $0x8] sm:$0xff] %v418_v36  ;;  %v205_v17 = vadd.f32 %v201_v3, %v159_v0  ;;  %v133_v5 = vmul.f32 %v943_v41, %v642_v12  ;;  %v142_v27 = vmul.f32 %v948_v14, %v686_v26  ;;  %v170_v1 = vmul.f32 %v613_v2, %v929_v18 }
  0x67   :  { %v251_v4 = vmul.f32 %v754_v55, %v246_v34  ;;  %v296_v54 = vmax.f32 %v960_v37, 0.0  ;;  %v976_v59 = vadd.f32 %v766_v60, %v337_v33  ;;  %v387_v61 = vadd.f32 %v383_v15, %v378_v43 }
  0x68   :  { %v137_v0 = vadd.f32 %v133_v5, %v128_v21  ;;  %v175_v12 = vmul.f32 %v943_v41, %v644_v13  ;;  %v184_v26 = vmul.f32 %v948_v14, %v689_v28  ;;  %v220_v2 = vmul.f32 %v626_v6, %v929_v18 }
  0x69   :  { %v255_v62 = vadd.f32 %v251_v4, %v205_v17  ;;  %v301_v36 = vmul.f32 %v757_v56, %v296_v54  ;;  %v346_v3 = vmax.f32 %v976_v59, 0.0  ;;  %v989_v33 = vadd.f32 %v796_v22, %v387_v61 }
  0x6a   :  { %v146_v5 = vadd.f32 %v142_v27, %v137_v0  ;;  %v179_v15 = vadd.f32 %v175_v12, %v170_v1  ;;  %v225_v13 = vmul.f32 %v943_v41, %v664_v19  ;;  %v234_v28 = vmul.f32 %v948_v14, %v700_v32 }
  0x6b   :  { %v305_v6 = vadd.f32 %v301_v36, %v255_v62  ;;  %v351_v21 = vmul.f32 %v775_v63, %v346_v3  ;;  %v396_v43 = vmax.f32 %v989_v33, 0.0  ;;  %v270_v17 = vmul.f32 %v628_v7, %v929_v18 }
  0x6c   :  { %v1006_v27 = vadd.f32 %v716_v38, %v146_v5  ;;  %v188_v19 = vadd.f32 %v184_v26, %v179_v15  ;;  %v229_v1 = vadd.f32 %v225_v13, %v220_v2  ;;  %v275_v32 = vmul.f32 %v943_v41, %v667_v20 }
  0x6d   :  { %v355_v4 = vadd.f32 %v351_v21, %v305_v6  ;;  %v401_v61 = vmul.f32 %v808_v30, %v396_v43  ;;  %v284_v0 = vmul.f32 %v948_v14, %v709_v35  ;;  %v320_v7 = vmul.f32 %v634_v10, %v929_v18 }
  0x6e   :  { %v155_v38 = vmax.f32 %v1006_v27, 0.0  ;;  %v1023_v12 = vadd.f32 %v719_v40, %v188_v19  ;;  %v238_v20 = vadd.f32 %v234_v28, %v229_v1  ;;  %v279_v26 = vadd.f32 %v275_v32, %v270_v17 }
  0x6f   :  { %v405_v2 = vadd.f32 %v401_v61, %v355_v4  ;;  %v325_v62 = vmul.f32 %v943_v41, %v676_v23  ;;  %v334_v35 = vmul.f32 %v948_v14, %v740_v48  ;;  %v370_v10 = vmul.f32 %v636_v11, %v929_v18 }
  0x70   :  { %v160_v40 = vmul.f32 %v743_v49, %v155_v38  ;;  %v197_v36 = vmax.f32 %v1023_v12, 0.0  ;;  %v1038_v5 = vadd.f32 %v726_v42, %v238_v20  ;;  %v288_v23 = vadd.f32 %v284_v0, %v279_v26 }
  0x71   :  { %v419_v48 = vadd.f32 %v811_v31, %v405_v2  ;;  %v329_v15 = vadd.f32 %v325_v62, %v320_v7  ;;  %v375_v11 = vmul.f32 %v943_v41, %v679_v24  ;;  %v384_v18 = vmul.f32 %v948_v14, %v784_v9 }
  0x72   :  { %v202_v49 = vmul.f32 %v746_v50, %v197_v36  ;;  %v247_v13 = vmax.f32 %v1038_v5, 0.0  ;;  %v293_v42 = vadd.f32 %v731_v44, %v288_v23  ;;  %v161_v28 = vstv %s995_s4 }
  0x73   :  { %423 = vst [vmem:[%s1124_s5 + $0x10] sm:$0xff] %v419_v48  ;;  %v338_v6 = vadd.f32 %v334_v35, %v329_v15  ;;  %v379_v21 = vadd.f32 %v375_v11, %v370_v10  ;;  %v1144_v24 = vmax.f32 %v734_v45, 0.0  ;;  %v207_v17 = vstv %s1003_s10 }
  0x74   :  { %v206_v9 = vadd.f32 %v202_v49, %v160_v40  ;;  %v252_v50 = vmul.f32 %v754_v55, %v247_v13  ;;  %v297_v14 = vmax.f32 %v293_v42, 0.0  ;;  %v1145_v19 = vmax.f32 %v737_v46, 0.0 }
  0x75   :  { %v162_v41 = vmul.f32 %v161_v28, %v1144_v24  ;;  %v343_v44 = vadd.f32 %v766_v60, %v338_v6  ;;  %v388_v32 = vadd.f32 %v384_v18, %v379_v21  ;;  %v257_v4 = vstv %s1017_s11 }
  0x76   :  { %v208_v1 = vmul.f32 %v207_v17, %v1145_v19  ;;  %v307_v61 = vstv %s1019_s12  ;;  %v256_v0 = vadd.f32 %v252_v50, %v206_v9  ;;  %v302_v45 = vmul.f32 %v757_v56, %v297_v14 }
  0x77   :  { %v1146_v12 = vmax.f32 %v749_v51, 0.0  ;;  %v347_v26 = vmax.f32 %v343_v44, 0.0  ;;  %v393_v55 = vadd.f32 %v796_v22, %v388_v32  ;;  %v1147_v46 = vmax.f32 %v761_v58, 0.0  ;;  %v1156_v32 = vld [vmem:[#allocation13_spill] sm:$0xff] }
  0x78   :  { %v212_v7 = vadd.f32 %v208_v1, %v162_v41  ;;  %v357_v62 = vstv %s1031_s13  ;;  %v306_v60 = vadd.f32 %v302_v45, %v256_v0  ;;  %v1148_v10 = vmax.f32 %v805_v29, 0.0 }
  0x79   :  { %v258_v20 = vmul.f32 %v257_v4, %v1146_v12  ;;  %v308_v2 = vmul.f32 %v307_v61, %v1147_v46  ;;  %v407_v5 = vstv %s1040_s14  ;;  %v352_v23 = vmul.f32 %v775_v63, %v347_v26  ;;  %v1153_v63 = vld [vmem:[#allocation12_spill] sm:$0xff] }
  0x7a   :  { %v358_v40 = vmul.f32 %v357_v62, %v1148_v10  ;;  %v397_v56 = vmax.f32 %v393_v55, 0.0  ;;  %v1149_v48 = vmax.f32 %v820_v47, 0.0  ;;  %v1150_v11 = vmax.f32 %v836_v39, 0.0  ;;  %v1158_v55 = vld [vmem:[#allocation14_spill] sm:$0xff] }
  0x7b   :  { %v262_v35 = vadd.f32 %v258_v20, %v212_v7  ;;  %v1151_v58 = vmax.f32 %v841_v52, 0.0  ;;  %v1152_v49 = vmax.f32 %v849_v8, 0.0  ;;  %v356_v6 = vadd.f32 %v352_v23, %v306_v60 }
  0x7c   :  { %v408_v51 = vmul.f32 %v407_v5, %v1149_v48  ;;  %v163_v22 = vmul.f32 %v161_v28, %v1150_v11  ;;  %v402_v29 = vmul.f32 %v808_v30, %v397_v56  ;;  %v1154_v41 = vmax.f32 %v1153_v63, 0.0 }
  0x7d   :  { %v312_v15 = vadd.f32 %v308_v2, %v262_v35  ;;  %v209_v18 = vmul.f32 %v207_v17, %v1151_v58  ;;  %v259_v42 = vmul.f32 %v257_v4, %v1152_v49  ;;  %v164_v47 = vmul.f32 %v161_v28, %v154_v16 }
  0x7e   :  { %v309_v9 = vmul.f32 %v307_v61, %v1154_v41  ;;  %v406_v50 = vadd.f32 %v402_v29, %v356_v6  ;;  %v425_v39 = vstv %s479_s17  ;;  %v1155_v19 = vmax.f32 %v920_v57, 0.0 }
  0x7f   :  { %v362_v21 = vadd.f32 %v358_v40, %v312_v15  ;;  %v213_v24 = vadd.f32 %v209_v18, %v163_v22  ;;  %v260_v8 = vmul.f32 %v257_v4, %v246_v34  ;;  %v1157_v30 = vmax.f32 %v1156_v32, 0.0 }
  0x80   :  { %v210_v52 = vmul.f32 %v207_v17, %v1155_v19  ;;  %v310_v45 = vmul.f32 %v307_v61, %v296_v54  ;;  %v420_v7 = vadd.f32 %v811_v31, %v406_v50  ;;  %v165_v16 = vmul.f32 %v161_v28, %v155_v38 }
  0x81   :  { %v412_v1 = vadd.f32 %v408_v51, %v362_v21  ;;  %v263_v44 = vadd.f32 %v259_v42, %v213_v24  ;;  %v359_v0 = vmul.f32 %v357_v62, %v1157_v30  ;;  %v211_v12 = vmul.f32 %v207_v17, %v197_v36 }
  0x82   :  { %v214_v53 = vadd.f32 %v210_v52, %v164_v47  ;;  %v1159_v25 = vmax.f32 %v1158_v55, 0.0  ;;  %v261_v46 = vmul.f32 %v257_v4, %v247_v13  ;;  %424 = vst [vmem:[%s1124_s5 + $0x18] sm:$0xff] %v420_v7  ;;  %v360_v37 = vmul.f32 %v357_v62, %v346_v3 }
  0x83   :  { %v426_v57 = vadd.f32 %v425_v39, %v412_v1  ;;  %v313_v20 = vadd.f32 %v309_v9, %v263_v44  ;;  %v215_v31 = vadd.f32 %v211_v12, %v165_v16  ;;  %v311_v54 = vmul.f32 %v307_v61, %v297_v14 }
  0x84   :  { %v409_v34 = vmul.f32 %v407_v5, %v1159_v25  ;;  %v264_v2 = vadd.f32 %v260_v8, %v214_v53  ;;  %v410_v36 = vmul.f32 %v407_v5, %v396_v43  ;;  %v361_v28 = vmul.f32 %v357_v62, %v347_v26 }
  0x85   :  { %488 = vst [vmem:[%s1124_s5 + $0x20] sm:$0xff] %v426_v57  ;;  %v363_v27 = vadd.f32 %v359_v0, %v313_v20  ;;  %v265_v13 = vadd.f32 %v261_v46, %v215_v31  ;;  %v411_v35 = vmul.f32 %v407_v5, %v397_v56 }
  0x86   :  { %v314_v38 = vadd.f32 %v310_v45, %v264_v2 }
  0x87   :  { %v413_v17 = vadd.f32 %v409_v34, %v363_v27  ;;  %v315_v60 = vadd.f32 %v311_v54, %v265_v13 }
  0x88   :  { %v364_v4 = vadd.f32 %v360_v37, %v314_v38 }
  0x89   :  { %v427_v10 = vadd.f32 %v425_v39, %v413_v17  ;;  %v365_v3 = vadd.f32 %v361_v28, %v315_v60 }
  0x8a   :  { %v414_v59 = vadd.f32 %v410_v36, %v364_v4 }
  0x8b   :  { %489 = vst [vmem:[%s1124_s5 + $0x28] sm:$0xff] %v427_v10  ;;  %v415_v61 = vadd.f32 %v411_v35, %v365_v3 }
  0x8c   :  { %v428_v14 = vadd.f32 %v425_v39, %v414_v59 }
  0x8d   :  { %v429_v33 = vadd.f32 %v425_v39, %v415_v61 }
  0x8e   :  { %490 = vst [vmem:[%s1124_s5 + $0x30] sm:$0xff] %v428_v14 }
  0x8f   :  { %491 = vst [vmem:[%s1124_s5 + $0x38] sm:$0xff] %v429_v33 }
  0x90   :  { %440 = vsyncpa [#allocation3], 1 }
  0x91   :  { %441 = vsyncpa [#allocation5], 1 }
  0x92   :  { %442 = vsyncpa [#allocation8], 1 }

</bundles_post_ra>
